<compile_context>
chip_gen: v6e
topology: v6e:2x2x1
jax: 0.10.0
libtpu: 0.0.40
codegen_flags: <defaults>
</compile_context>

<pallas_src>
import jax
import jax.numpy as jnp
from jax.experimental import pallas as pl
from jax.experimental.pallas import tpu as pltpu


def _round_up(x, m):
    return (x + m - 1) // m * m


# ----------------------------------------------------------------------------
# Pallas kernels
# ----------------------------------------------------------------------------

def _make_mm_kernel_single_k(relu_a, has_add):
    """out = [relu](A) @ B + bias [+ add]; single K step, no accumulator scratch."""
    def kernel(a_ref, b_ref, bias_ref, *rest):
        if has_add:
            add_ref, o_ref = rest
        else:
            (o_ref,) = rest
            add_ref = None
        a = a_ref[...]
        if relu_a:
            a = jnp.maximum(a, 0)
        acc = jnp.dot(a, b_ref[...], preferred_element_type=jnp.float32)
        acc = acc + bias_ref[...]
        if has_add:
            acc = acc + add_ref[...].astype(jnp.float32)
        o_ref[...] = acc.astype(o_ref.dtype)
    return kernel


def _make_mm_kernel_multi_k(relu_a, has_add):
    """Fallback for large K: k-grid with an f32 VMEM accumulator."""
    def kernel(a_ref, b_ref, bias_ref, *rest):
        if has_add:
            add_ref, o_ref, acc_ref = rest
        else:
            o_ref, acc_ref = rest
            add_ref = None

        @pl.when(pl.program_id(2) == 0)
        def _():
            acc_ref[...] = jnp.zeros_like(acc_ref)

        a = a_ref[...]
        if relu_a:
            a = jnp.maximum(a, 0)
        acc_ref[...] += jnp.dot(a, b_ref[...], preferred_element_type=jnp.float32)

        @pl.when(pl.program_id(2) == pl.num_programs(2) - 1)
        def _():
            acc = acc_ref[...] + bias_ref[...]
            if has_add:
                acc = acc + add_ref[...].astype(jnp.float32)
            o_ref[...] = acc.astype(o_ref.dtype)
    return kernel


def pallas_matmul_fused(a, b, bias, *, relu_a=False, add=None,
                        out_dtype=jnp.bfloat16, tk_max=2048):
    """(M,K)@(K,N) + bias[N] with optional fused input-ReLU and residual add.

    Operands are cast to bf16 (MXU), accumulation is f32. No channel padding of
    the output; only a tiny row pad when M is not a multiple of 8 (fc case)."""
    M, K = a.shape
    Kb, N = b.shape
    assert K == Kb
    a = a.astype(jnp.bfloat16)
    b = b.astype(jnp.bfloat16)
    bias2d = bias.astype(jnp.float32).reshape(1, N)

    Mp = _round_up(M, 8)
    if Mp != M:                                 # only hit by the tiny fc matmul
        a = jnp.concatenate([a, jnp.zeros((Mp - M, K), a.dtype)], axis=0)
        if add is not None:
            add = jnp.concatenate([add, jnp.zeros((Mp - M, N), add.dtype)], axis=0)

    single_k = K <= tk_max
    tk = K if single_k else 512
    tn = N                                      # true output width (no padded lanes)
    tm = 8
    for cand in (1024, 512, 256, 128, 64, 32, 16, 8):
        if Mp % cand == 0 and cand * tk * 2 <= (4 << 20):  # <= 4 MiB per A buffer
            tm = cand
            break

    has_add = add is not None
    operands = [a, b, bias2d] + ([add] if has_add else [])

    if single_k:
        grid = (Mp // tm, N // tn)
        in_specs = [pl.BlockSpec((tm, K), lambda i, j: (i, 0)),
                    pl.BlockSpec((K, tn), lambda i, j: (0, j)),
                    pl.BlockSpec((1, tn), lambda i, j: (0, j))]
        if has_add:
            in_specs.append(pl.BlockSpec((tm, tn), lambda i, j: (i, j)))
        out = pl.pallas_call(
            _make_mm_kernel_single_k(relu_a, has_add),
            out_shape=jax.ShapeDtypeStruct((Mp, N), out_dtype),
            grid_spec=pltpu.PrefetchScalarGridSpec(
                num_scalar_prefetch=0, grid=grid,
                in_specs=in_specs,
                out_specs=pl.BlockSpec((tm, tn), lambda i, j: (i, j))),
            compiler_params=pltpu.CompilerParams(
                dimension_semantics=("parallel", "parallel"),
                vmem_limit_bytes=32 * 1024 * 1024),
        )(*operands)
    else:
        Kp = _round_up(K, tk)
        if Kp != K:
            a = jnp.concatenate([a, jnp.zeros((Mp, Kp - K), a.dtype)], axis=1)
            b = jnp.concatenate([b, jnp.zeros((Kp - K, N), b.dtype)], axis=0)
            operands = [a, b, bias2d] + ([add] if has_add else [])
        grid = (Mp // tm, N // tn, Kp // tk)
        in_specs = [pl.BlockSpec((tm, tk), lambda i, j, k: (i, k)),
                    pl.BlockSpec((tk, tn), lambda i, j, k: (k, j)),
                    pl.BlockSpec((1, tn), lambda i, j, k: (0, j))]
        if has_add:
            in_specs.append(pl.BlockSpec((tm, tn), lambda i, j, k: (i, j)))
        out = pl.pallas_call(
            _make_mm_kernel_multi_k(relu_a, has_add),
            out_shape=jax.ShapeDtypeStruct((Mp, N), out_dtype),
            grid_spec=pltpu.PrefetchScalarGridSpec(
                num_scalar_prefetch=0, grid=grid,
                in_specs=in_specs,
                out_specs=pl.BlockSpec((tm, tn), lambda i, j, k: (i, j)),
                scratch_shapes=[pltpu.VMEM((tm, tn), jnp.float32)]),
            compiler_params=pltpu.CompilerParams(
                dimension_semantics=("parallel", "parallel", "arbitrary"),
                vmem_limit_bytes=32 * 1024 * 1024),
        )(*operands)
    return out[:M] if Mp != M else out


def _relu_gap_kernel(x_ref, o_ref):
    x = jnp.maximum(x_ref[...].astype(jnp.float32), 0.0)
    o_ref[...] = jnp.mean(x, axis=1)


def pallas_relu_global_avgpool(x):
    """Fused nl_layer() + AvgPool3d(8): x (N, 8, 8, 8, C) -> (N, C) float32."""
    N, D, H, W, C = x.shape
    S = D * H * W
    x3 = x.reshape(N, S, C)
    return pl.pallas_call(
        _relu_gap_kernel,
        out_shape=jax.ShapeDtypeStruct((N, C), jnp.float32),
        grid_spec=pltpu.PrefetchScalarGridSpec(
            num_scalar_prefetch=0, grid=(1,),
            in_specs=[pl.BlockSpec((N, S, C), lambda i: (0, 0, 0))],
            out_specs=pl.BlockSpec((N, C), lambda i: (0, 0))),
        compiler_params=pltpu.CompilerParams(
            dimension_semantics=("arbitrary",)),
    )(x3)


# ----------------------------------------------------------------------------
# Layer helpers (JAX data-movement glue around the Pallas kernels)
# ----------------------------------------------------------------------------

def _im2col(x, ksize, stride, padding):
    """x: (N, D, H, W, C) bf16 -> patches (N*Do*Ho*Wo, kd*kh*kw*C).
    Column order (kd, kh, kw, C) matches the weight reshape below."""
    N, D, H, W, C = x.shape
    kd, kh, kw = ksize
    sd, sh, sw = stride
    pd, ph, pw = padding
    xp = jnp.pad(x, ((0, 0), (pd, pd), (ph, ph), (pw, pw), (0, 0)))
    Do = (D + 2 * pd - kd) // sd + 1
    Ho = (H + 2 * ph - kh) // sh + 1
    Wo = (W + 2 * pw - kw) // sw + 1
    cols = []
    for a in range(kd):
        for b in range(kh):
            for c in range(kw):
                cols.append(xp[:, a:a + (Do - 1) * sd + 1:sd,
                               b:b + (Ho - 1) * sh + 1:sh,
                               c:c + (Wo - 1) * sw + 1:sw, :])
    patches = jnp.concatenate(cols, axis=-1)
    return patches.reshape(-1, kd * kh * kw * C), (N, Do, Ho, Wo)


def conv3d(x, p, stride=(1, 1, 1), padding=(0, 0, 0), relu_input=False, add=None):
    """Conv3d on channels-last bf16 activations via im2col + fused Pallas matmul.
    relu_input fuses a pre-activation ReLU; `add` fuses a residual add."""
    w = p['w']                                   # (kd, kh, kw, cin, cout)
    kd, kh, kw, cin, cout = w.shape
    if (kd, kh, kw) == (1, 1, 1) and stride == (1, 1, 1) and padding == (0, 0, 0):
        Nb, D, H, W, C = x.shape
        cols, out_sp = x.reshape(-1, C), (Nb, D, H, W)
    else:
        cols, out_sp = _im2col(x, (kd, kh, kw), stride, padding)
    add2 = None if add is None else add.reshape(-1, cout)
    y = pallas_matmul_fused(cols, w.reshape(kd * kh * kw * cin, cout), p['b'],
                            relu_a=relu_input, add=add2)
    return y.reshape(*out_sp, cout)


def avgpool2(x):
    """nn.AvgPool3d(kernel_size=2, stride=2) on (N, D, H, W, C)."""
    N, D, H, W, C = x.shape
    assert D % 2 == 0 and H % 2 == 0 and W % 2 == 0
    x = x.astype(jnp.float32).reshape(N, D // 2, 2, H // 2, 2, W // 2, 2, C)
    return x.mean(axis=(2, 4, 6)).astype(jnp.bfloat16)


# ----------------------------------------------------------------------------
# Parameter construction (deterministic; matches E_ResNet3D __init__ shapes)
# ----------------------------------------------------------------------------

def build_params(key, input_nc=1, output_nc=1, nef=64, n_blocks=4, vae_like=False):
    max_nef = 4
    keys = iter(jax.random.split(key, 64))

    def conv_p(kd, kh, kw, cin, cout):
        fan_in = kd * kh * kw * cin
        w = (jax.random.normal(next(keys), (kd, kh, kw, cin, cout), jnp.float32)
             * fan_in ** -0.5)
        b = jax.random.normal(next(keys), (cout,), jnp.float32) * 0.01
        return {'w': w.astype(jnp.bfloat16), 'b': b}

    def linear_p(cin, cout):
        w = jax.random.normal(next(keys), (cin, cout), jnp.float32) * cin ** -0.5
        b = jax.random.normal(next(keys), (cout,), jnp.float32) * 0.01
        return {'w': w.astype(jnp.bfloat16), 'b': b}

    params = {'conv0': conv_p(4, 4, 4, input_nc, nef)}   # Conv3d(k=4, s=2, p=1)
    blocks = []
    output_nef = nef
    for n in range(1, n_blocks):
        input_nef = nef * min(max_nef, n)
        output_nef = nef * min(max_nef, n + 1)
        blocks.append({
            'conv1': conv_p(3, 3, 3, input_nef, input_nef),     # conv3x3x3
            'conv2': conv_p(3, 3, 3, input_nef, output_nef),    # convMeanpool3d conv
            'short': conv_p(1, 1, 1, input_nef, output_nef),    # meanpoolConv3d conv
        })
    params['blocks'] = blocks
    params['fc'] = linear_p(output_nef, output_nc)
    params['fcVar'] = linear_p(output_nef, output_nc) if vae_like else None
    return params


# ----------------------------------------------------------------------------
# Forward pass (semantics of E_ResNet3D.forward with norm_layer=None, nl_layer=ReLU)
# ----------------------------------------------------------------------------

def e_resnet3d_forward(x, params):
    # x: (N, C, D, H, W) NCDHW -> channels-last bf16
    h = jnp.transpose(x, (0, 2, 3, 4, 1)).astype(jnp.bfloat16)

    # Conv3d(input_nc, nef, kernel_size=4, stride=2, padding=1, bias=True)
    h = conv3d(h, params['conv0'], stride=(2, 2, 2), padding=(1, 1, 1))

    # BasicBlock3D stack: out = conv_path(x) + shortcut(x)
    for blk in params['blocks']:
        c = conv3d(h, blk['conv1'], padding=(1, 1, 1), relu_input=True)  # ReLU->conv3x3x3
        c = conv3d(c, blk['conv2'], padding=(1, 1, 1), relu_input=True)  # ReLU->conv3x3x3
        c = avgpool2(c)                      # convMeanpool3d's AvgPool3d(2, 2)
        s = avgpool2(h)                      # meanpoolConv3d's AvgPool3d(2, 2)
        h = conv3d(s, blk['short'], add=c)   # 1x1x1 conv + fused residual add

    # nl_layer() + AvgPool3d(8): post-conv spatial must be 8^3 for the flatten
    # -> Linear(output_nef, output_nc) to line up (as in the PyTorch module).
    assert h.shape[1:4] == (8, 8, 8), h.shape
    feat = pallas_relu_global_avgpool(h)     # (N, output_nef) float32

    out = pallas_matmul_fused(feat, params['fc']['w'], params['fc']['b'],
                              out_dtype=jnp.float32)
    if params['fcVar'] is not None:          # vaeLike branch
        out_var = pallas_matmul_fused(feat, params['fcVar']['w'],
                                      params['fcVar']['b'], out_dtype=jnp.float32)
        return out, out_var
    return out


if __name__ == "__main__":
    key = jax.random.PRNGKey(0)
    kx, kp = jax.random.split(key)

    # Small config consistent with the module: spatial = 8 * 2**n_blocks.
    N, input_nc, S = 2, 1, 64
    nef, n_blocks, output_nc = 16, 3, 1

    x = jax.random.normal(kx, (N, input_nc, S, S, S), jnp.float32)
    params = build_params(kp, input_nc=input_nc, output_nc=output_nc,
                          nef=nef, n_blocks=n_blocks, vae_like=False)

    out = e_resnet3d_forward(x, params)
    out = jax.block_until_ready(out)
    assert out.shape == (N, output_nc), out.shape
    assert jnp.all(jnp.isfinite(out))
    print("KERNEL_OK")
</pallas_src>

<mosaic_0001>
module attributes {stable_mosaic.version = 11 : i64} {
  func.func @kernel(%arg0: i32, %arg1: i32, %arg2: memref<1024x64xbf16, #tpu.memory_space<vmem>>, %arg3: memref<64x16xbf16, #tpu.memory_space<vmem>>, %arg4: memref<1x16xf32, #tpu.memory_space<vmem>>, %arg5: memref<1024x16xbf16, #tpu.memory_space<vmem>>) attributes {dimension_semantics = [#tpu.dimension_semantics<parallel>, #tpu.dimension_semantics<parallel>], iteration_bounds = array<i64: 64, 1>, scalar_prefetch = 0 : i64, scratch_operands = 0 : i64, tpu.core_type = #tpu.core_type<tc>, window_params = [{transform_indices = @transform_0, window_bounds = array<i64: 1024, 64>}, {transform_indices = @transform_1, window_bounds = array<i64: 64, 16>}, {transform_indices = @transform_2, window_bounds = array<i64: 1, 16>}, {transform_indices = @transform_3, window_bounds = array<i64: 1024, 16>}]} {
    %c0 = arith.constant 0 : index
    %c0_0 = arith.constant 0 : index
    %0 = vector.load %arg2[%c0, %c0_0] : memref<1024x64xbf16, #tpu.memory_space<vmem>>, vector<1024x64xbf16>
    %c0_1 = arith.constant 0 : index
    %c0_2 = arith.constant 0 : index
    %1 = vector.load %arg3[%c0_1, %c0_2] : memref<64x16xbf16, #tpu.memory_space<vmem>>, vector<64x16xbf16>
    %cst = arith.constant dense<0.000000e+00> : vector<1024x16xf32>
    %2 = tpu.matmul %0, %1, %cst {dimension_numbers = #tpu.dot_dimension_numbers<[1], [0], [0], [1], [0, 0, 1, 1], [], []>} : vector<1024x64xbf16>, vector<64x16xbf16>, vector<1024x16xf32> -> vector<1024x16xf32>
    %c0_3 = arith.constant 0 : index
    %c0_4 = arith.constant 0 : index
    %3 = vector.load %arg4[%c0_3, %c0_4] : memref<1x16xf32, #tpu.memory_space<vmem>>, vector<1x16xf32>
    %4 = vector.broadcast %3 : vector<1x16xf32> to vector<1024x16xf32>
    %5 = arith.addf %2, %4 : vector<1024x16xf32>
    %6 = arith.truncf %5 : vector<1024x16xf32> to vector<1024x16xbf16>
    %c0_5 = arith.constant 0 : index
    %c0_6 = arith.constant 0 : index
    %7 = vector.load %arg5[%c0_5, %c0_6] : memref<1024x16xbf16, #tpu.memory_space<vmem>>, vector<1024x16xbf16>
    tpu.vector_store %arg5[%c0_5, %c0_6], %6 {strides = array<i32>} : memref<1024x16xbf16, #tpu.memory_space<vmem>>, vector<1024x16xbf16>,
    return
  }
  func.func @transform_0(%arg0: i32, %arg1: i32) -> (i32, i32) {
    %c0_i32 = arith.constant 0 : i32
    %c0_i32_0 = arith.constant 0 : i32
    return %arg0, %c0_i32 : i32, i32
  }
  func.func @transform_1(%arg0: i32, %arg1: i32) -> (i32, i32) {
    %c0_i32 = arith.constant 0 : i32
    %c0_i32_0 = arith.constant 0 : i32
    return %c0_i32, %arg1 : i32, i32
  }
  func.func @transform_2(%arg0: i32, %arg1: i32) -> (i32, i32) {
    %c0_i32 = arith.constant 0 : i32
    %c0_i32_0 = arith.constant 0 : i32
    return %c0_i32, %arg1 : i32, i32
  }
  func.func @transform_3(%arg0: i32, %arg1: i32) -> (i32, i32) {
    %c0_i32 = arith.constant 0 : i32
    return %arg0, %arg1 : i32, i32
  }
}

</mosaic_0001>

<bundles_post_ra>
// kernel: tpu_custom_call.1
= control target key start
LH: loop header
LB: loop body
LE: loop exit
PB: predicated region body
PF: predicated region fallthrough
CT: control target
= control target key end

     0   :  { %s2944_s12 = smov 0   ;;  %s2946_s13 = smov 0   ;;  %s3517_s0 = inlined_call_operand.vmem [shape: bf16[65536,64], index: 0, kind: input, shape index: {}]   ;;  %s3518_s1 = inlined_call_operand.vmem [shape: bf16[64,16], index: 1, kind: input, shape index: {}]   ;;  %s3519_s2 = inlined_call_operand.vmem [shape: f32[1,16], index: 2, kind: input, shape index: {}]   ;;  %s3520_s3 = inlined_call_operand.vmem [shape: bf16[65536,16], index: 3, kind: output, shape index: {}]  }
   0x1   :  { %s2948_s14 = smov 0  }
   0x2 LB: > { %s25_s15 = sadd.s32 1, %s2918_s13  ;;  %p2200_p0 = scmp.ge.s32.totalorder %s2922_s14, 1  ;;  %s2922_s14 = sphi %s2948_s14, %s13_s14   ;;  %s2918_s13 = sphi %s2946_s13, %s3522_s13   ;;  %s2914_s12 = sphi %s2944_s12, %s3521_s12  }
   0x3   : > { %p27_p1 = scmp.ge.s32.totalorder %s25_s15, 64  ;;  %p169_p2 = scmp.lt.s32.totalorder %s2922_s14, 65 }
   0x5   : > { %s3524_s15 = smov (%p27_p1, %s25_s15), 0  ;;  %p170_p3 = pnand %p2200_p0, %p169_p2 }
   0x6   : > { %s2201_s18 = sshll.u32 (!%p170_p3), %s2914_s12, 7 }
   0x7   : > { %173 = sbr.rel (%p170_p3) target bundleno = 353 (0x161), region = 32  ;;  %p204_p4 = scmp.lt.s32.totalorder (!%p170_p3), %s2201_s18, 8191 }
   0xc   : > { %v2832_v0 = vld [vmem:[%s3518_s1 + $0x18] sm:$0xff]   ;;  %v2833_v1 = vld [vmem:[%s3518_s1 + $0x10] sm:$0xff]   ;;  %s3526_s18 = smov (!%p204_p4, %s2201_s18), 8191  ;;  %v2834_v2 = vld [vmem:[%s3518_s1 + $0x8] sm:$0xff]   ;;  %vm713_vm0 = vcmask 523264   ;;  %vm1963_vm1 = vcmask 125952  }
   0xd   : > { %2664 = vmatprep.subr.bf16.mxu0 %v2832_v0  ;;  %2800 = vmatprep.subr.bf16.mxu1 %v2832_v0  ;;  %s2202_s23 = sshll.u32 %s3526_s18, 2  ;;  %v2835_v3 = vld [vmem:[%s3518_s1] sm:$0xff]  }
   0xe   : > { %2665 = vmatpush3.bf16.msra.mxu0 %v2832_v0  ;;  %2804 = vmatpush3.bf16.msra.mxu1 %v2832_v0  ;;  %s2982_s28 = scalar_lea.vmem %s3517_s0, %s2202_s23  ;;  %s3124_s6 = scalar_lea.vmem %s3520_s3, %s2202_s23 }
   0xf   : > { %2666 = vmatprep.subr.bf16.mxu0 %v2833_v1  ;;  %2801 = vmatprep.subr.bf16.mxu1 %v2833_v1  ;;  %v2836_v4 = vld [vmem:[%s2982_s28] sm:$0xff]   ;;  %v2838_v6 = vld [vmem:[%s2982_s28 + $0x8] sm:$0xff]   ;;  %v2840_v8 = vld [vmem:[%s2982_s28 + $0x10] sm:$0xff]  }
  0x10   : > { %v2837_v5 = vld [vmem:[%s2982_s28 + $0x100] sm:$0xff]   ;;  %2672 = vmatprep.mubr.msk.bf16.mxu0 %vm713_vm0, %v2836_v4  ;;  %v2839_v7 = vld [vmem:[%s2982_s28 + $0x108] sm:$0xff]   ;;  %v2841_v9 = vld [vmem:[%s2982_s28 + $0x110] sm:$0xff]  }
  0x11   : > { %2736 = vmatprep.mubr.msk.bf16.mxu1 %vm713_vm0, %v2837_v5  ;;  %v2842_v10 = vld [vmem:[%s2982_s28 + $0x18] sm:$0xff]   ;;  %v2844_v12 = vld [vmem:[%s2982_s28 + $0x20] sm:$0xff]   ;;  %v2846_v14 = vld [vmem:[%s2982_s28 + $0x28] sm:$0xff]  }
  0x12   : > { %2667 = vmatpush3.bf16.msra.mxu0 %v2833_v1  ;;  %2805 = vmatpush3.bf16.msra.mxu1 %v2833_v1  ;;  %v2843_v11 = vld [vmem:[%s2982_s28 + $0x118] sm:$0xff]   ;;  %v2845_v13 = vld [vmem:[%s2982_s28 + $0x120] sm:$0xff]   ;;  %v2847_v15 = vld [vmem:[%s2982_s28 + $0x128] sm:$0xff]  }
  0x13   : > { %2668 = vmatprep.subr.bf16.mxu0 %v2834_v2  ;;  %2802 = vmatprep.subr.bf16.mxu1 %v2834_v2  ;;  %v2848_v16 = vld [vmem:[%s2982_s28 + $0x30] sm:$0xff]   ;;  %v2850_v18 = vld [vmem:[%s2982_s28 + $0x38] sm:$0xff]   ;;  %v2852_v20 = vld [vmem:[%s2982_s28 + $0x40] sm:$0xff]  }
  0x14   : > { %v2849_v17 = vld [vmem:[%s2982_s28 + $0x130] sm:$0xff]   ;;  %v2851_v19 = vld [vmem:[%s2982_s28 + $0x138] sm:$0xff]   ;;  %v2853_v21 = vld [vmem:[%s2982_s28 + $0x140] sm:$0xff]  }
  0x15   : > { %v2854_v22 = vld [vmem:[%s2982_s28 + $0x48] sm:$0xff]   ;;  %v2856_v24 = vld [vmem:[%s2982_s28 + $0x50] sm:$0xff]   ;;  %v2858_v26 = vld [vmem:[%s2982_s28 + $0x58] sm:$0xff]  }
  0x16   : > { %2669 = vmatpush3.bf16.msra.mxu0 %v2834_v2  ;;  %2806 = vmatpush3.bf16.msra.mxu1 %v2834_v2  ;;  %v2855_v23 = vld [vmem:[%s2982_s28 + $0x148] sm:$0xff]   ;;  %v2857_v25 = vld [vmem:[%s2982_s28 + $0x150] sm:$0xff]   ;;  %v2859_v27 = vld [vmem:[%s2982_s28 + $0x158] sm:$0xff]  }
  0x17   : > { %2670 = vmatprep.subr.bf16.mxu0 %v2835_v3  ;;  %2803 = vmatprep.subr.bf16.mxu1 %v2835_v3  ;;  %v2860_v28 = vld [vmem:[%s2982_s28 + $0x60] sm:$0xff]   ;;  %v2862_v30 = vld [vmem:[%s2982_s28 + $0x68] sm:$0xff]   ;;  %v2864_v32 = vld [vmem:[%s2982_s28 + $0x70] sm:$0xff]  }
  0x18   : > { %v2861_v29 = vld [vmem:[%s2982_s28 + $0x160] sm:$0xff]   ;;  %v2863_v31 = vld [vmem:[%s2982_s28 + $0x168] sm:$0xff]   ;;  %v2865_v33 = vld [vmem:[%s2982_s28 + $0x170] sm:$0xff]  }
  0x19   : > { %v2866_v34 = vld [vmem:[%s2982_s28 + $0x78] sm:$0xff]   ;;  %v2868_v36 = vld [vmem:[%s2982_s28 + $0x80] sm:$0xff]   ;;  %v2870_v38 = vld [vmem:[%s2982_s28 + $0x88] sm:$0xff]  }
  0x1a   : > { %2671 = vmatpush3.bf16.msra.mxu0 %v2835_v3  ;;  %2807 = vmatpush3.bf16.msra.mxu1 %v2835_v3  ;;  %v2867_v35 = vld [vmem:[%s2982_s28 + $0x178] sm:$0xff]   ;;  %v2869_v37 = vld [vmem:[%s2982_s28 + $0x180] sm:$0xff]   ;;  %v2871_v39 = vld [vmem:[%s2982_s28 + $0x188] sm:$0xff]  }
  0x1b   : > { %v2872_v40 = vld [vmem:[%s2982_s28 + $0x90] sm:$0xff]   ;;  %v2874_v42 = vld [vmem:[%s2982_s28 + $0x98] sm:$0xff]   ;;  %v2876_v44 = vld [vmem:[%s2982_s28 + $0xa0] sm:$0xff]  }
  0x1c   : > { %v2873_v41 = vld [vmem:[%s2982_s28 + $0x190] sm:$0xff]   ;;  %v2875_v43 = vld [vmem:[%s2982_s28 + $0x198] sm:$0xff]   ;;  %v2877_v45 = vld [vmem:[%s2982_s28 + $0x1a0] sm:$0xff]  }
  0x1d   : > { %2673 = vmatmul.mubr.msk.bf16.vlgmr.msra.gmra.mxu0 %vm713_vm0, %v2838_v6  ;;  %2737 = vmatmul.mubr.msk.bf16.vlgmr.msra.gmra.mxu1 %vm713_vm0, %v2839_v7  ;;  %v2878_v46 = vld [vmem:[%s2982_s28 + $0xa8] sm:$0xff]   ;;  %v2880_v48 = vld [vmem:[%s2982_s28 + $0xb0] sm:$0xff]   ;;  %v2882_v50 = vld [vmem:[%s2982_s28 + $0xb8] sm:$0xff]  }
  0x1e   : > { %2676 = vmatprep.mubr.msk.bf16.mxu0 %vm713_vm0, %v2840_v8  ;;  %2740 = vmatprep.mubr.msk.bf16.mxu1 %vm713_vm0, %v2841_v9  ;;  %v2879_v47 = vld [vmem:[%s2982_s28 + $0x1a8] sm:$0xff]   ;;  %v2881_v49 = vld [vmem:[%s2982_s28 + $0x1b0] sm:$0xff]   ;;  %v2883_v51 = vld [vmem:[%s2982_s28 + $0x1b8] sm:$0xff]  }
  0x1f   : > { %v2884_v52 = vld [vmem:[%s2982_s28 + $0xc0] sm:$0xff]   ;;  %v2886_v54 = vld [vmem:[%s2982_s28 + $0xc8] sm:$0xff]   ;;  %v2888_v56 = vld [vmem:[%s2982_s28 + $0xd0] sm:$0xff]  }
  0x20   : > { %v2885_v53 = vld [vmem:[%s2982_s28 + $0x1c0] sm:$0xff]   ;;  %v2887_v55 = vld [vmem:[%s2982_s28 + $0x1c8] sm:$0xff]   ;;  %v2889_v57 = vld [vmem:[%s2982_s28 + $0x1d0] sm:$0xff]  }
  0x21   : > { %v2890_v58 = vld [vmem:[%s2982_s28 + $0xd8] sm:$0xff]   ;;  %v2892_v60 = vld [vmem:[%s2982_s28 + $0xe0] sm:$0xff]   ;;  %v2894_v62 = vld [vmem:[%s2982_s28 + $0xe8] sm:$0xff]  }
  0x22   : > { %v2891_v59 = vld [vmem:[%s2982_s28 + $0x1d8] sm:$0xff]   ;;  %v2893_v61 = vld [vmem:[%s2982_s28 + $0x1e0] sm:$0xff]   ;;  %v2895_v63 = vld [vmem:[%s2982_s28 + $0x1e8] sm:$0xff]  }
  0x23   : > { %v2896_v0 = vld [vmem:[%s2982_s28 + $0xf0] sm:$0xff]   ;;  %v2898_v2 = vld [vmem:[%s2982_s28 + $0xf8] sm:$0xff]   ;;  %v3115_v4 = vld [vmem:[%s3519_s2] ss:$0 sm:$0xff] }
  0x24   : > { %v2897_v1 = vld [vmem:[%s2982_s28 + $0x1f0] sm:$0xff]   ;;  %v2899_v3 = vld [vmem:[%s2982_s28 + $0x1f8] sm:$0xff]  }
  0x25   : > { %2677 = vmatmul.mubr.msk.bf16.gmra.mxu0 %vm713_vm0, %v2842_v10  ;;  %2741 = vmatmul.mubr.msk.bf16.gmra.mxu1 %vm713_vm0, %v2843_v11 }
  0x26   : > { %2680 = vmatprep.mubr.msk.bf16.mxu0 %vm713_vm0, %v2844_v12  ;;  %2744 = vmatprep.mubr.msk.bf16.mxu1 %vm713_vm0, %v2845_v13 }
  0x2d   : > { %2681 = vmatmul.mubr.msk.bf16.gmra.mxu0 %vm713_vm0, %v2846_v14  ;;  %2745 = vmatmul.mubr.msk.bf16.gmra.mxu1 %vm713_vm0, %v2847_v15 }
  0x2e   : > { %2684 = vmatprep.mubr.msk.bf16.mxu0 %vm713_vm0, %v2848_v16  ;;  %2748 = vmatprep.mubr.msk.bf16.mxu1 %vm713_vm0, %v2849_v17 }
  0x35   : > { %2685 = vmatmul.mubr.msk.bf16.gmra.mxu0 %vm713_vm0, %v2850_v18  ;;  %2749 = vmatmul.mubr.msk.bf16.gmra.mxu1 %vm713_vm0, %v2851_v19 }
  0x36   : > { %2688 = vmatprep.mubr.msk.bf16.mxu0 %vm713_vm0, %v2852_v20  ;;  %2752 = vmatprep.mubr.msk.bf16.mxu1 %vm713_vm0, %v2853_v21 }
  0x3d   : > { %2689 = vmatmul.mubr.msk.bf16.gmra.mxu0 %vm713_vm0, %v2854_v22  ;;  %2753 = vmatmul.mubr.msk.bf16.gmra.mxu1 %vm713_vm0, %v2855_v23 }
  0x3e   : > { %2692 = vmatprep.mubr.msk.bf16.mxu0 %vm713_vm0, %v2856_v24  ;;  %2756 = vmatprep.mubr.msk.bf16.mxu1 %vm713_vm0, %v2857_v25 }
  0x45   : > { %2693 = vmatmul.mubr.msk.bf16.gmra.mxu0 %vm713_vm0, %v2858_v26  ;;  %2757 = vmatmul.mubr.msk.bf16.gmra.mxu1 %vm713_vm0, %v2859_v27 }
  0x46   : > { %2696 = vmatprep.mubr.msk.bf16.mxu0 %vm713_vm0, %v2860_v28  ;;  %2760 = vmatprep.mubr.msk.bf16.mxu1 %vm713_vm0, %v2861_v29 }
  0x4d   : > { %2697 = vmatmul.mubr.msk.bf16.gmra.mxu0 %vm713_vm0, %v2862_v30  ;;  %2761 = vmatmul.mubr.msk.bf16.gmra.mxu1 %vm713_vm0, %v2863_v31 }
  0x4e   : > { %2700 = vmatprep.mubr.msk.bf16.mxu0 %vm713_vm0, %v2864_v32  ;;  %2764 = vmatprep.mubr.msk.bf16.mxu1 %vm713_vm0, %v2865_v33 }
  0x55   : > { %2701 = vmatmul.mubr.msk.bf16.gmra.mxu0 %vm713_vm0, %v2866_v34  ;;  %2765 = vmatmul.mubr.msk.bf16.gmra.mxu1 %vm713_vm0, %v2867_v35 }
  0x56   : > { %2704 = vmatprep.mubr.msk.bf16.mxu0 %vm713_vm0, %v2868_v36  ;;  %2768 = vmatprep.mubr.msk.bf16.mxu1 %vm713_vm0, %v2869_v37 }
  0x5d   : > { %2705 = vmatmul.mubr.msk.bf16.gmra.mxu0 %vm713_vm0, %v2870_v38  ;;  %2769 = vmatmul.mubr.msk.bf16.gmra.mxu1 %vm713_vm0, %v2871_v39 }
  0x5e   : > { %2708 = vmatprep.mubr.msk.bf16.mxu0 %vm713_vm0, %v2872_v40  ;;  %2772 = vmatprep.mubr.msk.bf16.mxu1 %vm713_vm0, %v2873_v41 }
  0x65   : > { %2709 = vmatmul.mubr.msk.bf16.gmra.mxu0 %vm713_vm0, %v2874_v42  ;;  %2773 = vmatmul.mubr.msk.bf16.gmra.mxu1 %vm713_vm0, %v2875_v43 }
  0x66   : > { %2712 = vmatprep.mubr.msk.bf16.mxu0 %vm713_vm0, %v2876_v44  ;;  %2776 = vmatprep.mubr.msk.bf16.mxu1 %vm713_vm0, %v2877_v45 }
  0x6d   : > { %2713 = vmatmul.mubr.msk.bf16.gmra.mxu0 %vm713_vm0, %v2878_v46  ;;  %2777 = vmatmul.mubr.msk.bf16.gmra.mxu1 %vm713_vm0, %v2879_v47 }
  0x6e   : > { %2716 = vmatprep.mubr.msk.bf16.mxu0 %vm713_vm0, %v2880_v48  ;;  %2780 = vmatprep.mubr.msk.bf16.mxu1 %vm713_vm0, %v2881_v49 }
  0x75   : > { %2717 = vmatmul.mubr.msk.bf16.gmra.mxu0 %vm713_vm0, %v2882_v50  ;;  %2781 = vmatmul.mubr.msk.bf16.gmra.mxu1 %vm713_vm0, %v2883_v51 }
  0x76   : > { %2720 = vmatprep.mubr.msk.bf16.mxu0 %vm713_vm0, %v2884_v52  ;;  %2784 = vmatprep.mubr.msk.bf16.mxu1 %vm713_vm0, %v2885_v53 }
  0x7d   : > { %2721 = vmatmul.mubr.msk.bf16.gmra.mxu0 %vm713_vm0, %v2886_v54  ;;  %2785 = vmatmul.mubr.msk.bf16.gmra.mxu1 %vm713_vm0, %v2887_v55 }
  0x7e   : > { %2724 = vmatprep.mubr.msk.bf16.mxu0 %vm713_vm0, %v2888_v56  ;;  %2788 = vmatprep.mubr.msk.bf16.mxu1 %vm713_vm0, %v2889_v57 }
  0x85   : > { %2725 = vmatmul.mubr.msk.bf16.gmra.mxu0 %vm713_vm0, %v2890_v58  ;;  %2789 = vmatmul.mubr.msk.bf16.gmra.mxu1 %vm713_vm0, %v2891_v59 }
  0x86   : > { %2728 = vmatprep.mubr.msk.bf16.mxu0 %vm713_vm0, %v2892_v60  ;;  %2792 = vmatprep.mubr.msk.bf16.mxu1 %vm713_vm0, %v2893_v61 }
  0x8d   : > { %2729 = vmatmul.mubr.msk.bf16.gmra.mxu0 %vm713_vm0, %v2894_v62  ;;  %2793 = vmatmul.mubr.msk.bf16.gmra.mxu1 %vm713_vm0, %v2895_v63 }
  0x8e   : > { %2732 = vmatprep.mubr.msk.bf16.mxu0 %vm713_vm0, %v2896_v0  ;;  %2796 = vmatprep.mubr.msk.bf16.mxu1 %vm713_vm0, %v2897_v1 }
  0x95   : > { %2733 = vmatmul.mubr.msk.bf16.gmra.mxu0 %vm713_vm0, %v2898_v2  ;;  %2797 = vmatmul.mubr.msk.bf16.gmra.mxu1 %vm713_vm0, %v2899_v3 }
  0xdd   : > { %v2674_v5 = vpop.f32.mrf.mxu0  ;;  %v2738_v6 = vpop.f32.mrf.mxu1 }
  0xde   : > { %v949_v7 = vadd.f32 %v2674_v5, %v3115_v4  ;;  %v1205_v8 = vadd.f32 %v2738_v6, %v3115_v4 }
  0xdf   : > { %v940_v9 = vpop.f32.mrf.mxu0  ;;  %v1196_v10 = vpop.f32.mrf.mxu1 }
  0xe0   : > { %v2470_v11 = vpack.c.bf16 %v949_v7, %v949_v7  ;;  %v2534_v12 = vpack.c.bf16 %v1205_v8, %v1205_v8  ;;  %v941_v13 = vadd.f32 %v3115_v4, %v940_v9  ;;  %v1197_v14 = vadd.f32 %v3115_v4, %v1196_v10 }
  0xe1   : > { %v2675_v15 = vpop.f32.mrf.mxu0  ;;  %v2739_v16 = vpop.f32.mrf.mxu1 }
  0xe2   : > { %1966 = vst.msk [vmem:[%s3124_s6 + $0x8] sm:$0xf] %vm1963_vm1, %v2470_v11  ;;  %2030 = vst.msk [vmem:[%s3124_s6 + $0x108] sm:$0xf] %vm1963_vm1, %v2534_v12  ;;  %v2468_v17 = vpack.c.bf16 %v941_v13, %v941_v13  ;;  %v2532_v18 = vpack.c.bf16 %v1197_v14, %v1197_v14  ;;  %v952_v19 = vadd.f32 %v2675_v15, %v3115_v4 }
  0xe3   : > { %v1208_v20 = vadd.f32 %v2739_v16, %v3115_v4  ;;  %v943_v21 = vpop.f32.mrf.mxu0  ;;  %v1199_v22 = vpop.f32.mrf.mxu1 }
  0xe4   : > { %1964 = vst.msk [vmem:[%s3124_s6] sm:$0xf] %vm1963_vm1, %v2468_v17  ;;  %2028 = vst.msk [vmem:[%s3124_s6 + $0x100] sm:$0xf] %vm1963_vm1, %v2532_v18  ;;  %v2471_v23 = vpack.c.bf16 %v952_v19, %v952_v19  ;;  %v944_v25 = vadd.f32 %v3115_v4, %v943_v21  ;;  %v1200_v26 = vadd.f32 %v3115_v4, %v1199_v22 }
  0xe5   : > { %v2535_v24 = vpack.c.bf16 %v1208_v20, %v1208_v20  ;;  %v2678_v27 = vpop.f32.mrf.mxu0  ;;  %v2742_v28 = vpop.f32.mrf.mxu1 }
  0xe6   : > { %1967 = vst.msk [vmem:[%s3124_s6 + $0xc] sm:$0xf] %vm1963_vm1, %v2471_v23  ;;  %v2469_v29 = vpack.c.bf16 %v944_v25, %v944_v25  ;;  %v2533_v30 = vpack.c.bf16 %v1200_v26, %v1200_v26  ;;  %v965_v31 = vadd.f32 %v2678_v27, %v3115_v4  ;;  %v1221_v32 = vadd.f32 %v2742_v28, %v3115_v4 }
  0xe7   : > { %2031 = vst.msk [vmem:[%s3124_s6 + $0x10c] sm:$0xf] %vm1963_vm1, %v2535_v24  ;;  %v956_v33 = vpop.f32.mrf.mxu0  ;;  %v1212_v34 = vpop.f32.mrf.mxu1 }
  0xe8   : > { %1965 = vst.msk [vmem:[%s3124_s6 + $0x4] sm:$0xf] %vm1963_vm1, %v2469_v29  ;;  %2029 = vst.msk [vmem:[%s3124_s6 + $0x104] sm:$0xf] %vm1963_vm1, %v2533_v30  ;;  %v2474_v35 = vpack.c.bf16 %v965_v31, %v965_v31  ;;  %v2538_v36 = vpack.c.bf16 %v1221_v32, %v1221_v32  ;;  %v957_v37 = vadd.f32 %v3115_v4, %v956_v33 }
  0xe9   : > { %v1213_v38 = vadd.f32 %v3115_v4, %v1212_v34  ;;  %v2679_v39 = vpop.f32.mrf.mxu0  ;;  %v2743_v40 = vpop.f32.mrf.mxu1 }
  0xea   : > { %1970 = vst.msk [vmem:[%s3124_s6 + $0x18] sm:$0xf] %vm1963_vm1, %v2474_v35  ;;  %2034 = vst.msk [vmem:[%s3124_s6 + $0x118] sm:$0xf] %vm1963_vm1, %v2538_v36  ;;  %v2472_v41 = vpack.c.bf16 %v957_v37, %v957_v37  ;;  %v968_v43 = vadd.f32 %v2679_v39, %v3115_v4  ;;  %v1224_v44 = vadd.f32 %v2743_v40, %v3115_v4 }
  0xeb   : > { %v2536_v42 = vpack.c.bf16 %v1213_v38, %v1213_v38  ;;  %v959_v45 = vpop.f32.mrf.mxu0  ;;  %v1215_v46 = vpop.f32.mrf.mxu1 }
  0xec   : > { %1968 = vst.msk [vmem:[%s3124_s6 + $0x10] sm:$0xf] %vm1963_vm1, %v2472_v41  ;;  %v2475_v47 = vpack.c.bf16 %v968_v43, %v968_v43  ;;  %v2539_v48 = vpack.c.bf16 %v1224_v44, %v1224_v44  ;;  %v960_v49 = vadd.f32 %v3115_v4, %v959_v45  ;;  %v1216_v50 = vadd.f32 %v3115_v4, %v1215_v46 }
  0xed   : > { %2032 = vst.msk [vmem:[%s3124_s6 + $0x110] sm:$0xf] %vm1963_vm1, %v2536_v42  ;;  %v2682_v51 = vpop.f32.mrf.mxu0  ;;  %v2746_v52 = vpop.f32.mrf.mxu1 }
  0xee   : > { %1971 = vst.msk [vmem:[%s3124_s6 + $0x1c] sm:$0xf] %vm1963_vm1, %v2475_v47  ;;  %2035 = vst.msk [vmem:[%s3124_s6 + $0x11c] sm:$0xf] %vm1963_vm1, %v2539_v48  ;;  %v2473_v53 = vpack.c.bf16 %v960_v49, %v960_v49  ;;  %v2537_v54 = vpack.c.bf16 %v1216_v50, %v1216_v50  ;;  %v981_v55 = vadd.f32 %v2682_v51, %v3115_v4 }
  0xef   : > { %v1237_v56 = vadd.f32 %v2746_v52, %v3115_v4  ;;  %v972_v57 = vpop.f32.mrf.mxu0  ;;  %v1228_v58 = vpop.f32.mrf.mxu1 }
  0xf0   : > { %1969 = vst.msk [vmem:[%s3124_s6 + $0x14] sm:$0xf] %vm1963_vm1, %v2473_v53  ;;  %2033 = vst.msk [vmem:[%s3124_s6 + $0x114] sm:$0xf] %vm1963_vm1, %v2537_v54  ;;  %v2478_v59 = vpack.c.bf16 %v981_v55, %v981_v55  ;;  %v973_v61 = vadd.f32 %v3115_v4, %v972_v57  ;;  %v1229_v62 = vadd.f32 %v3115_v4, %v1228_v58 }
  0xf1   : > { %v2542_v60 = vpack.c.bf16 %v1237_v56, %v1237_v56  ;;  %v2683_v63 = vpop.f32.mrf.mxu0  ;;  %v2747_v0 = vpop.f32.mrf.mxu1 }
  0xf2   : > { %1974 = vst.msk [vmem:[%s3124_s6 + $0x28] sm:$0xf] %vm1963_vm1, %v2478_v59  ;;  %v2476_v1 = vpack.c.bf16 %v973_v61, %v973_v61  ;;  %v2540_v2 = vpack.c.bf16 %v1229_v62, %v1229_v62  ;;  %v984_v3 = vadd.f32 %v2683_v63, %v3115_v4  ;;  %v1240_v5 = vadd.f32 %v2747_v0, %v3115_v4 }
  0xf3   : > { %2038 = vst.msk [vmem:[%s3124_s6 + $0x128] sm:$0xf] %vm1963_vm1, %v2542_v60  ;;  %v975_v6 = vpop.f32.mrf.mxu0  ;;  %v1231_v7 = vpop.f32.mrf.mxu1 }
  0xf4   : > { %1972 = vst.msk [vmem:[%s3124_s6 + $0x20] sm:$0xf] %vm1963_vm1, %v2476_v1  ;;  %2036 = vst.msk [vmem:[%s3124_s6 + $0x120] sm:$0xf] %vm1963_vm1, %v2540_v2  ;;  %v2479_v8 = vpack.c.bf16 %v984_v3, %v984_v3  ;;  %v2543_v9 = vpack.c.bf16 %v1240_v5, %v1240_v5  ;;  %v976_v10 = vadd.f32 %v3115_v4, %v975_v6 }
  0xf5   : > { %v1232_v11 = vadd.f32 %v3115_v4, %v1231_v7  ;;  %v2686_v12 = vpop.f32.mrf.mxu0  ;;  %v2750_v13 = vpop.f32.mrf.mxu1 }
  0xf6   : > { %1975 = vst.msk [vmem:[%s3124_s6 + $0x2c] sm:$0xf] %vm1963_vm1, %v2479_v8  ;;  %2039 = vst.msk [vmem:[%s3124_s6 + $0x12c] sm:$0xf] %vm1963_vm1, %v2543_v9  ;;  %v2477_v14 = vpack.c.bf16 %v976_v10, %v976_v10  ;;  %v997_v16 = vadd.f32 %v2686_v12, %v3115_v4  ;;  %v1253_v17 = vadd.f32 %v2750_v13, %v3115_v4 }
  0xf7   : > { %v2541_v15 = vpack.c.bf16 %v1232_v11, %v1232_v11  ;;  %v988_v18 = vpop.f32.mrf.mxu0  ;;  %v1244_v19 = vpop.f32.mrf.mxu1 }
  0xf8   : > { %1973 = vst.msk [vmem:[%s3124_s6 + $0x24] sm:$0xf] %vm1963_vm1, %v2477_v14  ;;  %v2482_v20 = vpack.c.bf16 %v997_v16, %v997_v16  ;;  %v2546_v21 = vpack.c.bf16 %v1253_v17, %v1253_v17  ;;  %v989_v22 = vadd.f32 %v3115_v4, %v988_v18  ;;  %v1245_v23 = vadd.f32 %v3115_v4, %v1244_v19 }
  0xf9   : > { %2037 = vst.msk [vmem:[%s3124_s6 + $0x124] sm:$0xf] %vm1963_vm1, %v2541_v15  ;;  %v2687_v24 = vpop.f32.mrf.mxu0  ;;  %v2751_v25 = vpop.f32.mrf.mxu1 }
  0xfa   : > { %1978 = vst.msk [vmem:[%s3124_s6 + $0x38] sm:$0xf] %vm1963_vm1, %v2482_v20  ;;  %2042 = vst.msk [vmem:[%s3124_s6 + $0x138] sm:$0xf] %vm1963_vm1, %v2546_v21  ;;  %v2480_v26 = vpack.c.bf16 %v989_v22, %v989_v22  ;;  %v2544_v27 = vpack.c.bf16 %v1245_v23, %v1245_v23  ;;  %v1000_v28 = vadd.f32 %v2687_v24, %v3115_v4 }
  0xfb   : > { %v1256_v29 = vadd.f32 %v2751_v25, %v3115_v4  ;;  %v991_v30 = vpop.f32.mrf.mxu0  ;;  %v1247_v31 = vpop.f32.mrf.mxu1 }
  0xfc   : > { %1976 = vst.msk [vmem:[%s3124_s6 + $0x30] sm:$0xf] %vm1963_vm1, %v2480_v26  ;;  %2040 = vst.msk [vmem:[%s3124_s6 + $0x130] sm:$0xf] %vm1963_vm1, %v2544_v27  ;;  %v2483_v32 = vpack.c.bf16 %v1000_v28, %v1000_v28  ;;  %v992_v34 = vadd.f32 %v3115_v4, %v991_v30  ;;  %v1248_v35 = vadd.f32 %v3115_v4, %v1247_v31 }
  0xfd   : > { %v2547_v33 = vpack.c.bf16 %v1256_v29, %v1256_v29  ;;  %v2690_v36 = vpop.f32.mrf.mxu0  ;;  %v2754_v37 = vpop.f32.mrf.mxu1 }
  0xfe   : > { %1979 = vst.msk [vmem:[%s3124_s6 + $0x3c] sm:$0xf] %vm1963_vm1, %v2483_v32  ;;  %v2481_v38 = vpack.c.bf16 %v992_v34, %v992_v34  ;;  %v2545_v39 = vpack.c.bf16 %v1248_v35, %v1248_v35  ;;  %v1013_v40 = vadd.f32 %v2690_v36, %v3115_v4  ;;  %v1269_v41 = vadd.f32 %v2754_v37, %v3115_v4 }
  0xff   : > { %2043 = vst.msk [vmem:[%s3124_s6 + $0x13c] sm:$0xf] %vm1963_vm1, %v2547_v33  ;;  %v1004_v42 = vpop.f32.mrf.mxu0  ;;  %v1260_v43 = vpop.f32.mrf.mxu1 }
 0x100   : > { %1977 = vst.msk [vmem:[%s3124_s6 + $0x34] sm:$0xf] %vm1963_vm1, %v2481_v38  ;;  %2041 = vst.msk [vmem:[%s3124_s6 + $0x134] sm:$0xf] %vm1963_vm1, %v2545_v39  ;;  %v2486_v44 = vpack.c.bf16 %v1013_v40, %v1013_v40  ;;  %v2550_v45 = vpack.c.bf16 %v1269_v41, %v1269_v41  ;;  %v1005_v46 = vadd.f32 %v3115_v4, %v1004_v42 }
 0x101   : > { %v1261_v47 = vadd.f32 %v3115_v4, %v1260_v43  ;;  %v2691_v48 = vpop.f32.mrf.mxu0  ;;  %v2755_v49 = vpop.f32.mrf.mxu1 }
 0x102   : > { %1982 = vst.msk [vmem:[%s3124_s6 + $0x48] sm:$0xf] %vm1963_vm1, %v2486_v44  ;;  %2046 = vst.msk [vmem:[%s3124_s6 + $0x148] sm:$0xf] %vm1963_vm1, %v2550_v45  ;;  %v2484_v50 = vpack.c.bf16 %v1005_v46, %v1005_v46  ;;  %v1016_v52 = vadd.f32 %v2691_v48, %v3115_v4  ;;  %v1272_v53 = vadd.f32 %v2755_v49, %v3115_v4 }
 0x103   : > { %v2548_v51 = vpack.c.bf16 %v1261_v47, %v1261_v47  ;;  %v1007_v54 = vpop.f32.mrf.mxu0  ;;  %v1263_v55 = vpop.f32.mrf.mxu1 }
 0x104   : > { %1980 = vst.msk [vmem:[%s3124_s6 + $0x40] sm:$0xf] %vm1963_vm1, %v2484_v50  ;;  %v2487_v56 = vpack.c.bf16 %v1016_v52, %v1016_v52  ;;  %v2551_v57 = vpack.c.bf16 %v1272_v53, %v1272_v53  ;;  %v1008_v58 = vadd.f32 %v3115_v4, %v1007_v54  ;;  %v1264_v59 = vadd.f32 %v3115_v4, %v1263_v55 }
 0x105   : > { %2044 = vst.msk [vmem:[%s3124_s6 + $0x140] sm:$0xf] %vm1963_vm1, %v2548_v51  ;;  %v2694_v60 = vpop.f32.mrf.mxu0  ;;  %v2758_v61 = vpop.f32.mrf.mxu1 }
 0x106   : > { %1983 = vst.msk [vmem:[%s3124_s6 + $0x4c] sm:$0xf] %vm1963_vm1, %v2487_v56  ;;  %2047 = vst.msk [vmem:[%s3124_s6 + $0x14c] sm:$0xf] %vm1963_vm1, %v2551_v57  ;;  %v2485_v62 = vpack.c.bf16 %v1008_v58, %v1008_v58  ;;  %v2549_v63 = vpack.c.bf16 %v1264_v59, %v1264_v59  ;;  %v1029_v0 = vadd.f32 %v2694_v60, %v3115_v4 }
 0x107   : > { %v1285_v1 = vadd.f32 %v2758_v61, %v3115_v4  ;;  %v1020_v2 = vpop.f32.mrf.mxu0  ;;  %v1276_v3 = vpop.f32.mrf.mxu1 }
 0x108   : > { %1981 = vst.msk [vmem:[%s3124_s6 + $0x44] sm:$0xf] %vm1963_vm1, %v2485_v62  ;;  %2045 = vst.msk [vmem:[%s3124_s6 + $0x144] sm:$0xf] %vm1963_vm1, %v2549_v63  ;;  %v2490_v5 = vpack.c.bf16 %v1029_v0, %v1029_v0  ;;  %v1021_v7 = vadd.f32 %v3115_v4, %v1020_v2  ;;  %v1277_v8 = vadd.f32 %v3115_v4, %v1276_v3 }
 0x109   : > { %v2554_v6 = vpack.c.bf16 %v1285_v1, %v1285_v1  ;;  %v2695_v9 = vpop.f32.mrf.mxu0  ;;  %v2759_v10 = vpop.f32.mrf.mxu1 }
 0x10a   : > { %1986 = vst.msk [vmem:[%s3124_s6 + $0x58] sm:$0xf] %vm1963_vm1, %v2490_v5  ;;  %v2488_v11 = vpack.c.bf16 %v1021_v7, %v1021_v7  ;;  %v2552_v12 = vpack.c.bf16 %v1277_v8, %v1277_v8  ;;  %v1032_v13 = vadd.f32 %v2695_v9, %v3115_v4  ;;  %v1288_v14 = vadd.f32 %v2759_v10, %v3115_v4 }
 0x10b   : > { %2050 = vst.msk [vmem:[%s3124_s6 + $0x158] sm:$0xf] %vm1963_vm1, %v2554_v6  ;;  %v1023_v15 = vpop.f32.mrf.mxu0  ;;  %v1279_v16 = vpop.f32.mrf.mxu1 }
 0x10c   : > { %1984 = vst.msk [vmem:[%s3124_s6 + $0x50] sm:$0xf] %vm1963_vm1, %v2488_v11  ;;  %2048 = vst.msk [vmem:[%s3124_s6 + $0x150] sm:$0xf] %vm1963_vm1, %v2552_v12  ;;  %v2491_v17 = vpack.c.bf16 %v1032_v13, %v1032_v13  ;;  %v2555_v18 = vpack.c.bf16 %v1288_v14, %v1288_v14  ;;  %v1024_v19 = vadd.f32 %v3115_v4, %v1023_v15 }
 0x10d   : > { %v1280_v20 = vadd.f32 %v3115_v4, %v1279_v16  ;;  %v2698_v21 = vpop.f32.mrf.mxu0  ;;  %v2762_v22 = vpop.f32.mrf.mxu1 }
 0x10e   : > { %1987 = vst.msk [vmem:[%s3124_s6 + $0x5c] sm:$0xf] %vm1963_vm1, %v2491_v17  ;;  %2051 = vst.msk [vmem:[%s3124_s6 + $0x15c] sm:$0xf] %vm1963_vm1, %v2555_v18  ;;  %v2489_v23 = vpack.c.bf16 %v1024_v19, %v1024_v19  ;;  %v1045_v25 = vadd.f32 %v2698_v21, %v3115_v4  ;;  %v1301_v26 = vadd.f32 %v2762_v22, %v3115_v4 }
 0x10f   : > { %v2553_v24 = vpack.c.bf16 %v1280_v20, %v1280_v20  ;;  %v1036_v27 = vpop.f32.mrf.mxu0  ;;  %v1292_v28 = vpop.f32.mrf.mxu1 }
 0x110   : > { %1985 = vst.msk [vmem:[%s3124_s6 + $0x54] sm:$0xf] %vm1963_vm1, %v2489_v23  ;;  %v2494_v29 = vpack.c.bf16 %v1045_v25, %v1045_v25  ;;  %v2558_v30 = vpack.c.bf16 %v1301_v26, %v1301_v26  ;;  %v1037_v31 = vadd.f32 %v3115_v4, %v1036_v27  ;;  %v1293_v32 = vadd.f32 %v3115_v4, %v1292_v28 }
 0x111   : > { %2049 = vst.msk [vmem:[%s3124_s6 + $0x154] sm:$0xf] %vm1963_vm1, %v2553_v24  ;;  %v2699_v33 = vpop.f32.mrf.mxu0  ;;  %v2763_v34 = vpop.f32.mrf.mxu1 }
 0x112   : > { %1990 = vst.msk [vmem:[%s3124_s6 + $0x68] sm:$0xf] %vm1963_vm1, %v2494_v29  ;;  %2054 = vst.msk [vmem:[%s3124_s6 + $0x168] sm:$0xf] %vm1963_vm1, %v2558_v30  ;;  %v2492_v35 = vpack.c.bf16 %v1037_v31, %v1037_v31  ;;  %v2556_v36 = vpack.c.bf16 %v1293_v32, %v1293_v32  ;;  %v1048_v37 = vadd.f32 %v2699_v33, %v3115_v4 }
 0x113   : > { %v1304_v38 = vadd.f32 %v2763_v34, %v3115_v4  ;;  %v1039_v39 = vpop.f32.mrf.mxu0  ;;  %v1295_v40 = vpop.f32.mrf.mxu1 }
 0x114   : > { %1988 = vst.msk [vmem:[%s3124_s6 + $0x60] sm:$0xf] %vm1963_vm1, %v2492_v35  ;;  %2052 = vst.msk [vmem:[%s3124_s6 + $0x160] sm:$0xf] %vm1963_vm1, %v2556_v36  ;;  %v2495_v41 = vpack.c.bf16 %v1048_v37, %v1048_v37  ;;  %v1040_v43 = vadd.f32 %v3115_v4, %v1039_v39  ;;  %v1296_v44 = vadd.f32 %v3115_v4, %v1295_v40 }
 0x115   : > { %v2559_v42 = vpack.c.bf16 %v1304_v38, %v1304_v38  ;;  %v2702_v45 = vpop.f32.mrf.mxu0  ;;  %v2766_v46 = vpop.f32.mrf.mxu1 }
 0x116   : > { %1991 = vst.msk [vmem:[%s3124_s6 + $0x6c] sm:$0xf] %vm1963_vm1, %v2495_v41  ;;  %v2493_v47 = vpack.c.bf16 %v1040_v43, %v1040_v43  ;;  %v2557_v48 = vpack.c.bf16 %v1296_v44, %v1296_v44  ;;  %v1061_v49 = vadd.f32 %v2702_v45, %v3115_v4  ;;  %v1317_v50 = vadd.f32 %v2766_v46, %v3115_v4 }
 0x117   : > { %2055 = vst.msk [vmem:[%s3124_s6 + $0x16c] sm:$0xf] %vm1963_vm1, %v2559_v42  ;;  %v1052_v51 = vpop.f32.mrf.mxu0  ;;  %v1308_v52 = vpop.f32.mrf.mxu1 }
 0x118   : > { %1989 = vst.msk [vmem:[%s3124_s6 + $0x64] sm:$0xf] %vm1963_vm1, %v2493_v47  ;;  %2053 = vst.msk [vmem:[%s3124_s6 + $0x164] sm:$0xf] %vm1963_vm1, %v2557_v48  ;;  %v2498_v53 = vpack.c.bf16 %v1061_v49, %v1061_v49  ;;  %v2562_v54 = vpack.c.bf16 %v1317_v50, %v1317_v50  ;;  %v1053_v55 = vadd.f32 %v3115_v4, %v1052_v51 }
 0x119   : > { %v1309_v56 = vadd.f32 %v3115_v4, %v1308_v52  ;;  %v2703_v57 = vpop.f32.mrf.mxu0  ;;  %v2767_v58 = vpop.f32.mrf.mxu1 }
 0x11a   : > { %1994 = vst.msk [vmem:[%s3124_s6 + $0x78] sm:$0xf] %vm1963_vm1, %v2498_v53  ;;  %2058 = vst.msk [vmem:[%s3124_s6 + $0x178] sm:$0xf] %vm1963_vm1, %v2562_v54  ;;  %v2496_v59 = vpack.c.bf16 %v1053_v55, %v1053_v55  ;;  %v1064_v61 = vadd.f32 %v2703_v57, %v3115_v4  ;;  %v1320_v62 = vadd.f32 %v2767_v58, %v3115_v4 }
 0x11b   : > { %v2560_v60 = vpack.c.bf16 %v1309_v56, %v1309_v56  ;;  %v1055_v63 = vpop.f32.mrf.mxu0  ;;  %v1311_v0 = vpop.f32.mrf.mxu1 }
 0x11c   : > { %1992 = vst.msk [vmem:[%s3124_s6 + $0x70] sm:$0xf] %vm1963_vm1, %v2496_v59  ;;  %v2499_v1 = vpack.c.bf16 %v1064_v61, %v1064_v61  ;;  %v2563_v2 = vpack.c.bf16 %v1320_v62, %v1320_v62  ;;  %v1056_v3 = vadd.f32 %v3115_v4, %v1055_v63  ;;  %v1312_v5 = vadd.f32 %v3115_v4, %v1311_v0 }
 0x11d   : > { %2056 = vst.msk [vmem:[%s3124_s6 + $0x170] sm:$0xf] %vm1963_vm1, %v2560_v60  ;;  %v2706_v6 = vpop.f32.mrf.mxu0  ;;  %v2770_v7 = vpop.f32.mrf.mxu1 }
 0x11e   : > { %1995 = vst.msk [vmem:[%s3124_s6 + $0x7c] sm:$0xf] %vm1963_vm1, %v2499_v1  ;;  %2059 = vst.msk [vmem:[%s3124_s6 + $0x17c] sm:$0xf] %vm1963_vm1, %v2563_v2  ;;  %v2497_v8 = vpack.c.bf16 %v1056_v3, %v1056_v3  ;;  %v2561_v9 = vpack.c.bf16 %v1312_v5, %v1312_v5  ;;  %v1077_v10 = vadd.f32 %v2706_v6, %v3115_v4 }
 0x11f   : > { %v1333_v11 = vadd.f32 %v2770_v7, %v3115_v4  ;;  %v1068_v12 = vpop.f32.mrf.mxu0  ;;  %v1324_v13 = vpop.f32.mrf.mxu1 }
 0x120   : > { %1993 = vst.msk [vmem:[%s3124_s6 + $0x74] sm:$0xf] %vm1963_vm1, %v2497_v8  ;;  %2057 = vst.msk [vmem:[%s3124_s6 + $0x174] sm:$0xf] %vm1963_vm1, %v2561_v9  ;;  %v2502_v14 = vpack.c.bf16 %v1077_v10, %v1077_v10  ;;  %v1069_v16 = vadd.f32 %v3115_v4, %v1068_v12  ;;  %v1325_v17 = vadd.f32 %v3115_v4, %v1324_v13 }
 0x121   : > { %v2566_v15 = vpack.c.bf16 %v1333_v11, %v1333_v11  ;;  %v2707_v18 = vpop.f32.mrf.mxu0  ;;  %v2771_v19 = vpop.f32.mrf.mxu1 }
 0x122   : > { %1998 = vst.msk [vmem:[%s3124_s6 + $0x88] sm:$0xf] %vm1963_vm1, %v2502_v14  ;;  %v2500_v20 = vpack.c.bf16 %v1069_v16, %v1069_v16  ;;  %v2564_v21 = vpack.c.bf16 %v1325_v17, %v1325_v17  ;;  %v1080_v22 = vadd.f32 %v2707_v18, %v3115_v4  ;;  %v1336_v23 = vadd.f32 %v2771_v19, %v3115_v4 }
 0x123   : > { %2062 = vst.msk [vmem:[%s3124_s6 + $0x188] sm:$0xf] %vm1963_vm1, %v2566_v15  ;;  %v1071_v24 = vpop.f32.mrf.mxu0  ;;  %v1327_v25 = vpop.f32.mrf.mxu1 }
 0x124   : > { %1996 = vst.msk [vmem:[%s3124_s6 + $0x80] sm:$0xf] %vm1963_vm1, %v2500_v20  ;;  %2060 = vst.msk [vmem:[%s3124_s6 + $0x180] sm:$0xf] %vm1963_vm1, %v2564_v21  ;;  %v2503_v26 = vpack.c.bf16 %v1080_v22, %v1080_v22  ;;  %v2567_v27 = vpack.c.bf16 %v1336_v23, %v1336_v23  ;;  %v1072_v28 = vadd.f32 %v3115_v4, %v1071_v24 }
 0x125   : > { %v1328_v29 = vadd.f32 %v3115_v4, %v1327_v25  ;;  %v2710_v30 = vpop.f32.mrf.mxu0  ;;  %v2774_v31 = vpop.f32.mrf.mxu1 }
 0x126   : > { %1999 = vst.msk [vmem:[%s3124_s6 + $0x8c] sm:$0xf] %vm1963_vm1, %v2503_v26  ;;  %2063 = vst.msk [vmem:[%s3124_s6 + $0x18c] sm:$0xf] %vm1963_vm1, %v2567_v27  ;;  %v2501_v32 = vpack.c.bf16 %v1072_v28, %v1072_v28  ;;  %v1093_v34 = vadd.f32 %v2710_v30, %v3115_v4  ;;  %v1349_v35 = vadd.f32 %v2774_v31, %v3115_v4 }
 0x127   : > { %v2565_v33 = vpack.c.bf16 %v1328_v29, %v1328_v29  ;;  %v1084_v36 = vpop.f32.mrf.mxu0  ;;  %v1340_v37 = vpop.f32.mrf.mxu1 }
 0x128   : > { %1997 = vst.msk [vmem:[%s3124_s6 + $0x84] sm:$0xf] %vm1963_vm1, %v2501_v32  ;;  %v2506_v38 = vpack.c.bf16 %v1093_v34, %v1093_v34  ;;  %v2570_v39 = vpack.c.bf16 %v1349_v35, %v1349_v35  ;;  %v1085_v40 = vadd.f32 %v3115_v4, %v1084_v36  ;;  %v1341_v41 = vadd.f32 %v3115_v4, %v1340_v37 }
 0x129   : > { %2061 = vst.msk [vmem:[%s3124_s6 + $0x184] sm:$0xf] %vm1963_vm1, %v2565_v33  ;;  %v2711_v42 = vpop.f32.mrf.mxu0  ;;  %v2775_v43 = vpop.f32.mrf.mxu1 }
 0x12a   : > { %2002 = vst.msk [vmem:[%s3124_s6 + $0x98] sm:$0xf] %vm1963_vm1, %v2506_v38  ;;  %2066 = vst.msk [vmem:[%s3124_s6 + $0x198] sm:$0xf] %vm1963_vm1, %v2570_v39  ;;  %v2504_v44 = vpack.c.bf16 %v1085_v40, %v1085_v40  ;;  %v2568_v45 = vpack.c.bf16 %v1341_v41, %v1341_v41  ;;  %v1096_v46 = vadd.f32 %v2711_v42, %v3115_v4 }
 0x12b   : > { %v1352_v47 = vadd.f32 %v2775_v43, %v3115_v4  ;;  %v1087_v48 = vpop.f32.mrf.mxu0  ;;  %v1343_v49 = vpop.f32.mrf.mxu1 }
 0x12c   : > { %2000 = vst.msk [vmem:[%s3124_s6 + $0x90] sm:$0xf] %vm1963_vm1, %v2504_v44  ;;  %2064 = vst.msk [vmem:[%s3124_s6 + $0x190] sm:$0xf] %vm1963_vm1, %v2568_v45  ;;  %v2507_v50 = vpack.c.bf16 %v1096_v46, %v1096_v46  ;;  %v1088_v52 = vadd.f32 %v3115_v4, %v1087_v48  ;;  %v1344_v53 = vadd.f32 %v3115_v4, %v1343_v49 }
 0x12d   : > { %v2571_v51 = vpack.c.bf16 %v1352_v47, %v1352_v47  ;;  %v2714_v54 = vpop.f32.mrf.mxu0  ;;  %v2778_v55 = vpop.f32.mrf.mxu1 }
 0x12e   : > { %2003 = vst.msk [vmem:[%s3124_s6 + $0x9c] sm:$0xf] %vm1963_vm1, %v2507_v50  ;;  %v2505_v56 = vpack.c.bf16 %v1088_v52, %v1088_v52  ;;  %v2569_v57 = vpack.c.bf16 %v1344_v53, %v1344_v53  ;;  %v1109_v58 = vadd.f32 %v2714_v54, %v3115_v4  ;;  %v1365_v59 = vadd.f32 %v2778_v55, %v3115_v4 }
 0x12f   : > { %2067 = vst.msk [vmem:[%s3124_s6 + $0x19c] sm:$0xf] %vm1963_vm1, %v2571_v51  ;;  %v1100_v60 = vpop.f32.mrf.mxu0  ;;  %v1356_v61 = vpop.f32.mrf.mxu1 }
 0x130   : > { %2001 = vst.msk [vmem:[%s3124_s6 + $0x94] sm:$0xf] %vm1963_vm1, %v2505_v56  ;;  %2065 = vst.msk [vmem:[%s3124_s6 + $0x194] sm:$0xf] %vm1963_vm1, %v2569_v57  ;;  %v2510_v62 = vpack.c.bf16 %v1109_v58, %v1109_v58  ;;  %v2574_v63 = vpack.c.bf16 %v1365_v59, %v1365_v59  ;;  %v1101_v0 = vadd.f32 %v3115_v4, %v1100_v60 }
 0x131   : > { %v1357_v1 = vadd.f32 %v3115_v4, %v1356_v61  ;;  %v2715_v2 = vpop.f32.mrf.mxu0  ;;  %v2779_v3 = vpop.f32.mrf.mxu1 }
 0x132   : > { %2006 = vst.msk [vmem:[%s3124_s6 + $0xa8] sm:$0xf] %vm1963_vm1, %v2510_v62  ;;  %2070 = vst.msk [vmem:[%s3124_s6 + $0x1a8] sm:$0xf] %vm1963_vm1, %v2574_v63  ;;  %v2508_v5 = vpack.c.bf16 %v1101_v0, %v1101_v0  ;;  %v1112_v7 = vadd.f32 %v2715_v2, %v3115_v4  ;;  %v1368_v8 = vadd.f32 %v2779_v3, %v3115_v4 }
 0x133   : > { %v2572_v6 = vpack.c.bf16 %v1357_v1, %v1357_v1  ;;  %v1103_v9 = vpop.f32.mrf.mxu0  ;;  %v1359_v10 = vpop.f32.mrf.mxu1 }
 0x134   : > { %2004 = vst.msk [vmem:[%s3124_s6 + $0xa0] sm:$0xf] %vm1963_vm1, %v2508_v5  ;;  %v2511_v11 = vpack.c.bf16 %v1112_v7, %v1112_v7  ;;  %v2575_v12 = vpack.c.bf16 %v1368_v8, %v1368_v8  ;;  %v1104_v13 = vadd.f32 %v3115_v4, %v1103_v9  ;;  %v1360_v14 = vadd.f32 %v3115_v4, %v1359_v10 }
 0x135   : > { %2068 = vst.msk [vmem:[%s3124_s6 + $0x1a0] sm:$0xf] %vm1963_vm1, %v2572_v6  ;;  %v2718_v15 = vpop.f32.mrf.mxu0  ;;  %v2782_v16 = vpop.f32.mrf.mxu1 }
 0x136   : > { %2007 = vst.msk [vmem:[%s3124_s6 + $0xac] sm:$0xf] %vm1963_vm1, %v2511_v11  ;;  %2071 = vst.msk [vmem:[%s3124_s6 + $0x1ac] sm:$0xf] %vm1963_vm1, %v2575_v12  ;;  %v2509_v17 = vpack.c.bf16 %v1104_v13, %v1104_v13  ;;  %v2573_v18 = vpack.c.bf16 %v1360_v14, %v1360_v14  ;;  %v1125_v19 = vadd.f32 %v2718_v15, %v3115_v4 }
 0x137   : > { %v1381_v20 = vadd.f32 %v2782_v16, %v3115_v4  ;;  %v1116_v21 = vpop.f32.mrf.mxu0  ;;  %v1372_v22 = vpop.f32.mrf.mxu1 }
 0x138   : > { %2005 = vst.msk [vmem:[%s3124_s6 + $0xa4] sm:$0xf] %vm1963_vm1, %v2509_v17  ;;  %2069 = vst.msk [vmem:[%s3124_s6 + $0x1a4] sm:$0xf] %vm1963_vm1, %v2573_v18  ;;  %v2514_v23 = vpack.c.bf16 %v1125_v19, %v1125_v19  ;;  %v1117_v25 = vadd.f32 %v3115_v4, %v1116_v21  ;;  %v1373_v26 = vadd.f32 %v3115_v4, %v1372_v22 }
 0x139   : > { %v2578_v24 = vpack.c.bf16 %v1381_v20, %v1381_v20  ;;  %v2719_v27 = vpop.f32.mrf.mxu0  ;;  %v2783_v28 = vpop.f32.mrf.mxu1 }
 0x13a   : > { %2010 = vst.msk [vmem:[%s3124_s6 + $0xb8] sm:$0xf] %vm1963_vm1, %v2514_v23  ;;  %v2512_v29 = vpack.c.bf16 %v1117_v25, %v1117_v25  ;;  %v2576_v30 = vpack.c.bf16 %v1373_v26, %v1373_v26  ;;  %v1128_v31 = vadd.f32 %v2719_v27, %v3115_v4  ;;  %v1384_v32 = vadd.f32 %v2783_v28, %v3115_v4 }
 0x13b   : > { %2074 = vst.msk [vmem:[%s3124_s6 + $0x1b8] sm:$0xf] %vm1963_vm1, %v2578_v24  ;;  %v1119_v33 = vpop.f32.mrf.mxu0  ;;  %v1375_v34 = vpop.f32.mrf.mxu1 }
 0x13c   : > { %2008 = vst.msk [vmem:[%s3124_s6 + $0xb0] sm:$0xf] %vm1963_vm1, %v2512_v29  ;;  %2072 = vst.msk [vmem:[%s3124_s6 + $0x1b0] sm:$0xf] %vm1963_vm1, %v2576_v30  ;;  %v2515_v35 = vpack.c.bf16 %v1128_v31, %v1128_v31  ;;  %v2579_v36 = vpack.c.bf16 %v1384_v32, %v1384_v32  ;;  %v1120_v37 = vadd.f32 %v3115_v4, %v1119_v33 }
 0x13d   : > { %v1376_v38 = vadd.f32 %v3115_v4, %v1375_v34  ;;  %v2722_v39 = vpop.f32.mrf.mxu0  ;;  %v2786_v40 = vpop.f32.mrf.mxu1 }
 0x13e   : > { %2011 = vst.msk [vmem:[%s3124_s6 + $0xbc] sm:$0xf] %vm1963_vm1, %v2515_v35  ;;  %2075 = vst.msk [vmem:[%s3124_s6 + $0x1bc] sm:$0xf] %vm1963_vm1, %v2579_v36  ;;  %v2513_v41 = vpack.c.bf16 %v1120_v37, %v1120_v37  ;;  %v1141_v43 = vadd.f32 %v2722_v39, %v3115_v4  ;;  %v1397_v44 = vadd.f32 %v2786_v40, %v3115_v4 }
 0x13f   : > { %v2577_v42 = vpack.c.bf16 %v1376_v38, %v1376_v38  ;;  %v1132_v45 = vpop.f32.mrf.mxu0  ;;  %v1388_v46 = vpop.f32.mrf.mxu1 }
 0x140   : > { %2009 = vst.msk [vmem:[%s3124_s6 + $0xb4] sm:$0xf] %vm1963_vm1, %v2513_v41  ;;  %v2518_v47 = vpack.c.bf16 %v1141_v43, %v1141_v43  ;;  %v2582_v48 = vpack.c.bf16 %v1397_v44, %v1397_v44  ;;  %v1133_v49 = vadd.f32 %v3115_v4, %v1132_v45  ;;  %v1389_v50 = vadd.f32 %v3115_v4, %v1388_v46 }
 0x141   : > { %2073 = vst.msk [vmem:[%s3124_s6 + $0x1b4] sm:$0xf] %vm1963_vm1, %v2577_v42  ;;  %v2723_v51 = vpop.f32.mrf.mxu0  ;;  %v2787_v52 = vpop.f32.mrf.mxu1 }
 0x142   : > { %2014 = vst.msk [vmem:[%s3124_s6 + $0xc8] sm:$0xf] %vm1963_vm1, %v2518_v47  ;;  %2078 = vst.msk [vmem:[%s3124_s6 + $0x1c8] sm:$0xf] %vm1963_vm1, %v2582_v48  ;;  %v2516_v53 = vpack.c.bf16 %v1133_v49, %v1133_v49  ;;  %v2580_v54 = vpack.c.bf16 %v1389_v50, %v1389_v50  ;;  %v1144_v55 = vadd.f32 %v2723_v51, %v3115_v4 }
 0x143   : > { %v1400_v56 = vadd.f32 %v2787_v52, %v3115_v4  ;;  %v1135_v57 = vpop.f32.mrf.mxu0  ;;  %v1391_v58 = vpop.f32.mrf.mxu1 }
 0x144   : > { %2012 = vst.msk [vmem:[%s3124_s6 + $0xc0] sm:$0xf] %vm1963_vm1, %v2516_v53  ;;  %2076 = vst.msk [vmem:[%s3124_s6 + $0x1c0] sm:$0xf] %vm1963_vm1, %v2580_v54  ;;  %v2519_v59 = vpack.c.bf16 %v1144_v55, %v1144_v55  ;;  %v1136_v61 = vadd.f32 %v3115_v4, %v1135_v57  ;;  %v1392_v62 = vadd.f32 %v3115_v4, %v1391_v58 }
 0x145   : > { %v2583_v60 = vpack.c.bf16 %v1400_v56, %v1400_v56  ;;  %v2726_v63 = vpop.f32.mrf.mxu0  ;;  %v2790_v0 = vpop.f32.mrf.mxu1 }
 0x146   : > { %2015 = vst.msk [vmem:[%s3124_s6 + $0xcc] sm:$0xf] %vm1963_vm1, %v2519_v59  ;;  %v2517_v1 = vpack.c.bf16 %v1136_v61, %v1136_v61  ;;  %v2581_v2 = vpack.c.bf16 %v1392_v62, %v1392_v62  ;;  %v1157_v3 = vadd.f32 %v2726_v63, %v3115_v4  ;;  %v1413_v5 = vadd.f32 %v2790_v0, %v3115_v4 }
 0x147   : > { %2079 = vst.msk [vmem:[%s3124_s6 + $0x1cc] sm:$0xf] %vm1963_vm1, %v2583_v60  ;;  %v1148_v6 = vpop.f32.mrf.mxu0  ;;  %v1404_v7 = vpop.f32.mrf.mxu1 }
 0x148   : > { %2013 = vst.msk [vmem:[%s3124_s6 + $0xc4] sm:$0xf] %vm1963_vm1, %v2517_v1  ;;  %2077 = vst.msk [vmem:[%s3124_s6 + $0x1c4] sm:$0xf] %vm1963_vm1, %v2581_v2  ;;  %v2522_v8 = vpack.c.bf16 %v1157_v3, %v1157_v3  ;;  %v2586_v9 = vpack.c.bf16 %v1413_v5, %v1413_v5  ;;  %v1149_v10 = vadd.f32 %v3115_v4, %v1148_v6 }
 0x149   : > { %v1405_v11 = vadd.f32 %v3115_v4, %v1404_v7  ;;  %v2727_v12 = vpop.f32.mrf.mxu0  ;;  %v2791_v13 = vpop.f32.mrf.mxu1 }
 0x14a   : > { %2018 = vst.msk [vmem:[%s3124_s6 + $0xd8] sm:$0xf] %vm1963_vm1, %v2522_v8  ;;  %2082 = vst.msk [vmem:[%s3124_s6 + $0x1d8] sm:$0xf] %vm1963_vm1, %v2586_v9  ;;  %v2520_v14 = vpack.c.bf16 %v1149_v10, %v1149_v10  ;;  %v1160_v16 = vadd.f32 %v2727_v12, %v3115_v4  ;;  %v1416_v17 = vadd.f32 %v2791_v13, %v3115_v4 }
 0x14b   : > { %v2584_v15 = vpack.c.bf16 %v1405_v11, %v1405_v11  ;;  %v1151_v18 = vpop.f32.mrf.mxu0  ;;  %v1407_v19 = vpop.f32.mrf.mxu1 }
 0x14c   : > { %2016 = vst.msk [vmem:[%s3124_s6 + $0xd0] sm:$0xf] %vm1963_vm1, %v2520_v14  ;;  %v2523_v20 = vpack.c.bf16 %v1160_v16, %v1160_v16  ;;  %v2587_v21 = vpack.c.bf16 %v1416_v17, %v1416_v17  ;;  %v1152_v22 = vadd.f32 %v3115_v4, %v1151_v18  ;;  %v1408_v23 = vadd.f32 %v3115_v4, %v1407_v19 }
 0x14d   : > { %2080 = vst.msk [vmem:[%s3124_s6 + $0x1d0] sm:$0xf] %vm1963_vm1, %v2584_v15  ;;  %v2730_v24 = vpop.f32.mrf.mxu0  ;;  %v2794_v25 = vpop.f32.mrf.mxu1 }
 0x14e   : > { %2019 = vst.msk [vmem:[%s3124_s6 + $0xdc] sm:$0xf] %vm1963_vm1, %v2523_v20  ;;  %2083 = vst.msk [vmem:[%s3124_s6 + $0x1dc] sm:$0xf] %vm1963_vm1, %v2587_v21  ;;  %v2521_v26 = vpack.c.bf16 %v1152_v22, %v1152_v22  ;;  %v2585_v27 = vpack.c.bf16 %v1408_v23, %v1408_v23  ;;  %v1173_v28 = vadd.f32 %v2730_v24, %v3115_v4 }
 0x14f   : > { %v1429_v29 = vadd.f32 %v2794_v25, %v3115_v4  ;;  %v1164_v30 = vpop.f32.mrf.mxu0  ;;  %v1420_v31 = vpop.f32.mrf.mxu1 }
 0x150   : > { %2017 = vst.msk [vmem:[%s3124_s6 + $0xd4] sm:$0xf] %vm1963_vm1, %v2521_v26  ;;  %2081 = vst.msk [vmem:[%s3124_s6 + $0x1d4] sm:$0xf] %vm1963_vm1, %v2585_v27  ;;  %v2526_v32 = vpack.c.bf16 %v1173_v28, %v1173_v28  ;;  %v1165_v34 = vadd.f32 %v3115_v4, %v1164_v30  ;;  %v1421_v35 = vadd.f32 %v3115_v4, %v1420_v31 }
 0x151   : > { %v2590_v33 = vpack.c.bf16 %v1429_v29, %v1429_v29  ;;  %v2731_v36 = vpop.f32.mrf.mxu0  ;;  %v2795_v37 = vpop.f32.mrf.mxu1 }
 0x152   : > { %2022 = vst.msk [vmem:[%s3124_s6 + $0xe8] sm:$0xf] %vm1963_vm1, %v2526_v32  ;;  %v2524_v38 = vpack.c.bf16 %v1165_v34, %v1165_v34  ;;  %v2588_v39 = vpack.c.bf16 %v1421_v35, %v1421_v35  ;;  %v1176_v40 = vadd.f32 %v2731_v36, %v3115_v4  ;;  %v1432_v41 = vadd.f32 %v2795_v37, %v3115_v4 }
 0x153   : > { %2086 = vst.msk [vmem:[%s3124_s6 + $0x1e8] sm:$0xf] %vm1963_vm1, %v2590_v33  ;;  %v1167_v42 = vpop.f32.mrf.mxu0  ;;  %v1423_v43 = vpop.f32.mrf.mxu1 }
 0x154   : > { %2020 = vst.msk [vmem:[%s3124_s6 + $0xe0] sm:$0xf] %vm1963_vm1, %v2524_v38  ;;  %2084 = vst.msk [vmem:[%s3124_s6 + $0x1e0] sm:$0xf] %vm1963_vm1, %v2588_v39  ;;  %v2527_v44 = vpack.c.bf16 %v1176_v40, %v1176_v40  ;;  %v2591_v45 = vpack.c.bf16 %v1432_v41, %v1432_v41  ;;  %v1168_v46 = vadd.f32 %v3115_v4, %v1167_v42 }
 0x155   : > { %v1424_v47 = vadd.f32 %v3115_v4, %v1423_v43  ;;  %v2734_v48 = vpop.f32.mrf.mxu0  ;;  %v2798_v49 = vpop.f32.mrf.mxu1 }
 0x156   : > { %2023 = vst.msk [vmem:[%s3124_s6 + $0xec] sm:$0xf] %vm1963_vm1, %v2527_v44  ;;  %2087 = vst.msk [vmem:[%s3124_s6 + $0x1ec] sm:$0xf] %vm1963_vm1, %v2591_v45  ;;  %v2525_v50 = vpack.c.bf16 %v1168_v46, %v1168_v46  ;;  %v1189_v52 = vadd.f32 %v2734_v48, %v3115_v4  ;;  %v1445_v53 = vadd.f32 %v2798_v49, %v3115_v4 }
 0x157   : > { %v2589_v51 = vpack.c.bf16 %v1424_v47, %v1424_v47  ;;  %v1180_v54 = vpop.f32.mrf.mxu0  ;;  %v1436_v55 = vpop.f32.mrf.mxu1 }
 0x158   : > { %2021 = vst.msk [vmem:[%s3124_s6 + $0xe4] sm:$0xf] %vm1963_vm1, %v2525_v50  ;;  %v2530_v56 = vpack.c.bf16 %v1189_v52, %v1189_v52  ;;  %v2594_v57 = vpack.c.bf16 %v1445_v53, %v1445_v53  ;;  %v1181_v58 = vadd.f32 %v3115_v4, %v1180_v54  ;;  %v1437_v59 = vadd.f32 %v3115_v4, %v1436_v55 }
 0x159   : > { %2085 = vst.msk [vmem:[%s3124_s6 + $0x1e4] sm:$0xf] %vm1963_vm1, %v2589_v51  ;;  %v2735_v60 = vpop.f32.mrf.mxu0  ;;  %v2799_v61 = vpop.f32.mrf.mxu1 }
 0x15a   : > { %2026 = vst.msk [vmem:[%s3124_s6 + $0xf8] sm:$0xf] %vm1963_vm1, %v2530_v56  ;;  %2090 = vst.msk [vmem:[%s3124_s6 + $0x1f8] sm:$0xf] %vm1963_vm1, %v2594_v57  ;;  %v2528_v62 = vpack.c.bf16 %v1181_v58, %v1181_v58  ;;  %v2592_v63 = vpack.c.bf16 %v1437_v59, %v1437_v59  ;;  %v1192_v0 = vadd.f32 %v2735_v60, %v3115_v4 }
 0x15b   : > { %v1448_v1 = vadd.f32 %v2799_v61, %v3115_v4  ;;  %v1183_v2 = vpop.f32.mrf.mxu0  ;;  %v1439_v3 = vpop.f32.mrf.mxu1 }
 0x15c   : > { %2024 = vst.msk [vmem:[%s3124_s6 + $0xf0] sm:$0xf] %vm1963_vm1, %v2528_v62  ;;  %2088 = vst.msk [vmem:[%s3124_s6 + $0x1f0] sm:$0xf] %vm1963_vm1, %v2592_v63  ;;  %v2531_v5 = vpack.c.bf16 %v1192_v0, %v1192_v0  ;;  %v1184_v7 = vadd.f32 %v3115_v4, %v1183_v2  ;;  %v1440_v8 = vadd.f32 %v3115_v4, %v1439_v3 }
 0x15d   : > { %v2595_v6 = vpack.c.bf16 %v1448_v1, %v1448_v1 }
 0x15e   : > { %2027 = vst.msk [vmem:[%s3124_s6 + $0xfc] sm:$0xf] %vm1963_vm1, %v2531_v5  ;;  %v2529_v9 = vpack.c.bf16 %v1184_v7, %v1184_v7  ;;  %v2593_v10 = vpack.c.bf16 %v1440_v8, %v1440_v8 }
 0x15f   : > { %2091 = vst.msk [vmem:[%s3124_s6 + $0x1fc] sm:$0xf] %vm1963_vm1, %v2595_v6 }
 0x160   : > { %2025 = vst.msk [vmem:[%s3124_s6 + $0xf4] sm:$0xf] %vm1963_vm1, %v2529_v9  ;;  %2089 = vst.msk [vmem:[%s3124_s6 + $0x1f4] sm:$0xf] %vm1963_vm1, %v2593_v10 }
 0x161 PF: > { %s13_s14 = sadd.s32 1, %s2922_s14   ;;  %s3521_s12 = smov %s2918_s13 }
 0x162   : > { %p10_p5 = scmp.ge.s32.totalorder %s13_s14, 66   ;;  %s3522_s13 = smov %s3524_s15 }
 0x164   :  { %12 = sbr.rel (!%p10_p5) target bundleno = 2 (0x2), region = 68 }

</bundles_post_ra>
